<compile_context>
chip_gen: v6e
topology: v6e:2x2x1
jax: 0.10.0
libtpu: 0.0.40
codegen_flags: <defaults>
</compile_context>

<pallas_src>
import functools

import jax
import jax.numpy as jnp
import numpy as np
from jax.experimental import pallas as pl
from jax.experimental.pallas import tpu as pltpu

LANES = 128  # lane width; latent head is padded lane-dense to this


def _round_up(x, m):
    return (x + m - 1) // m * m


def _d_tiling(d, tile_d):
    """Effective (lane-aligned) D tile and padded D; shared by packer/forward."""
    td = min(tile_d, _round_up(d, LANES))
    return td, _round_up(d, td)


# ---------------------------------------------------------------------------
# Kernel 1: encoder K-reduction over D + fused (mu|logvar) head + decoder L1.
# grid = (n_m, n_d); D axis (last) is the reduction, M axis is parallel.
# ---------------------------------------------------------------------------
def _encoder_kernel(x_ref, we_ref, be_ref, wst_ref, bst_ref, eps_ref,
                    wd1_ref, bd1_ref,
                    stats_ref, h2_ref,
                    acc_ref, *, latent):
    k = pl.program_id(1)

    @pl.when(k == 0)
    def _():
        acc_ref[...] = jnp.zeros_like(acc_ref)

    # x streamed in f32; cast to bf16 in-register (free under the MXU),
    # f32 accumulation on the MXU.
    acc_ref[...] += jnp.dot(x_ref[...].astype(jnp.bfloat16), we_ref[...],
                            preferred_element_type=jnp.float32)

    @pl.when(k == pl.num_programs(1) - 1)
    def _():
        h = jnp.maximum(acc_ref[...] + be_ref[...], 0.0)          # [TM, H] f32

        # Fused (mu | logvar | zero-pad) head: one lane-dense [TM, 128] result.
        stats = jnp.dot(h.astype(jnp.bfloat16), wst_ref[...],
                        preferred_element_type=jnp.float32) + bst_ref[...]
        stats_ref[...] = stats

        # Reparameterization, spread over the padded 128 lanes:
        #   lanes [0, L)  : mu
        #   lanes [L, 2L) : exp(0.5*logvar) * eps   (eps pre-placed there)
        # Mask the logvar lanes BEFORE the exp so exp(0.5*mu) cannot overflow
        # to inf and contaminate z via inf * 0 = NaN on mu / pad lanes.
        lane = jax.lax.broadcasted_iota(jnp.int32, stats.shape, 1)
        mu_part = jnp.where(lane < latent, stats, 0.0)
        lv_masked = jnp.where((lane >= latent) & (lane < 2 * latent), stats, 0.0)
        noise_part = jnp.exp(0.5 * lv_masked) * eps_ref[...]      # eps==0 off lv lanes
        z_spread = mu_part + noise_part                           # [TM, 128] f32

        # Wd1 is padded with duplicated rows so both lane groups hit the same
        # wd1 rows, hence z_spread @ Wd1_pad == (mu + sigma*eps) @ wd1.
        h2 = jnp.dot(z_spread.astype(jnp.bfloat16), wd1_ref[...],
                     preferred_element_type=jnp.float32) + bd1_ref[...]
        h2_ref[...] = jnp.maximum(h2, 0.0).astype(h2_ref.dtype)


# ---------------------------------------------------------------------------
# Kernel 2: decoder output layer.  grid = (n_d, n_m) with M as the fast axis
# so each Wd2 tile stays VMEM-resident across all M tiles.
# ---------------------------------------------------------------------------
def _decoder_kernel(h2_ref, wd2_ref, bd2_ref, recon_ref):
    recon_ref[...] = (jnp.dot(h2_ref[...], wd2_ref[...],
                              preferred_element_type=jnp.float32)
                      + bd2_ref[...]).astype(recon_ref.dtype)


# ---------------------------------------------------------------------------
# One-time weight packing (hoisted out of the per-step forward).
# ---------------------------------------------------------------------------
def prepare_params(params, d_in, *, tile_d=1024):
    """Pack weights once into kernel-friendly bf16/f32 layouts."""
    (we, be, wmu, bmu, wlv, blv, wd1, bd1, wd2, bd2) = params
    f32, bf16 = jnp.float32, jnp.bfloat16
    Hh = we.shape[1]
    L = wmu.shape[1]
    assert 2 * L <= LANES, "latent dim must fit in half a lane group"
    _, Dp = _d_tiling(d_in, tile_d)

    we_p = jnp.pad(we.astype(bf16), ((0, Dp - d_in), (0, 0)))
    be_p = be.reshape(1, Hh).astype(f32)

    # fused mu/logvar head, padded lane-dense to 128 output lanes
    wst = jnp.concatenate(
        [wmu, wlv, jnp.zeros((Hh, LANES - 2 * L), wmu.dtype)], axis=1).astype(bf16)
    bst = jnp.concatenate(
        [bmu.reshape(1, L), blv.reshape(1, L),
         jnp.zeros((1, LANES - 2 * L), f32)], axis=1).astype(f32)

    # decoder first layer: lane groups [0,L) and [L,2L) both map onto wd1 rows
    wd1_p = jnp.concatenate(
        [wd1, wd1, jnp.zeros((LANES - 2 * L, Hh), wd1.dtype)], axis=0).astype(bf16)
    bd1_p = bd1.reshape(1, Hh).astype(f32)

    wd2_p = jnp.pad(wd2.astype(bf16), ((0, 0), (0, Dp - d_in)))
    bd2_p = jnp.pad(bd2.reshape(1, d_in).astype(f32), ((0, 0), (0, Dp - d_in)))

    return (we_p, be_p, wst, bst, wd1_p, bd1_p, wd2_p, bd2_p)


# ---------------------------------------------------------------------------
# Forward pass: takes the pre-packed weights.
# ---------------------------------------------------------------------------
def vae_forward(x_img, packed, eps, *, tile_m=None, tile_d=1024,
                out_dtype=jnp.bfloat16):
    """x_img: [B, C, H, W] f32. Returns (recon [B,C,H,W] out_dtype, mu, logvar)."""
    (we_p, be_p, wst, bst, wd1_p, bd1_p, wd2_p, bd2_p) = packed

    B = x_img.shape[0]
    D = int(np.prod(x_img.shape[1:]))
    Hh = we_p.shape[1]
    L = eps.shape[1]
    assert 2 * L <= LANES, "latent dim must fit in half a lane group"

    td, Dp = _d_tiling(D, tile_d)
    assert we_p.shape[0] == Dp and wd2_p.shape[1] == Dp, \
        "packed params were built with a different d_in / tile_d"

    # Batch-aware M tiling: pad only to the sublane granule (8), not 128.
    if tile_m is None:
        tile_m = min(128, _round_up(B, 8))
    Mp = _round_up(B, tile_m)
    n_m, n_d = Mp // tile_m, Dp // td

    f32 = jnp.float32

    # x stays f32 (cast in-kernel); pad only if shapes require it.
    x = x_img.reshape(B, D)
    if (Mp, Dp) != (B, D):
        x = jnp.pad(x, ((0, Mp - B), (0, Dp - D)))

    # eps placed in lanes [L, 2L) so it lines up with the logvar lanes.
    eps_p = jnp.pad(eps.astype(f32), ((0, Mp - B), (L, LANES - 2 * L)))

    # ---- kernel 1: encoder reduction + latent head + decoder hidden ----
    stats, h2 = pl.pallas_call(
        functools.partial(_encoder_kernel, latent=L),
        out_shape=(jax.ShapeDtypeStruct((Mp, LANES), f32),
                   jax.ShapeDtypeStruct((Mp, Hh), jnp.bfloat16)),
        grid=(n_m, n_d),
        in_specs=[
            pl.BlockSpec((tile_m, td), lambda i, k: (i, k)),      # x tile (f32)
            pl.BlockSpec((td, Hh), lambda i, k: (k, 0)),          # We tile
            pl.BlockSpec((1, Hh), lambda i, k: (0, 0)),           # be
            pl.BlockSpec((Hh, LANES), lambda i, k: (0, 0)),       # Wmu|Wlv
            pl.BlockSpec((1, LANES), lambda i, k: (0, 0)),        # bmu|blv
            pl.BlockSpec((tile_m, LANES), lambda i, k: (i, 0)),   # eps
            pl.BlockSpec((LANES, Hh), lambda i, k: (0, 0)),       # Wd1 (padded K)
            pl.BlockSpec((1, Hh), lambda i, k: (0, 0)),           # bd1
        ],
        out_specs=[
            pl.BlockSpec((tile_m, LANES), lambda i, k: (i, 0)),   # stats
            pl.BlockSpec((tile_m, Hh), lambda i, k: (i, 0)),      # h2
        ],
        scratch_shapes=[pltpu.VMEM((tile_m, Hh), f32)],
        compiler_params=pltpu.CompilerParams(
            dimension_semantics=("parallel", "arbitrary"),
            # Fine for default tiles; raise (64-96 MiB v5e/v6e, <=48 MiB v7x)
            # if tile_m/tile_d are grown.
            vmem_limit_bytes=32 * 1024 * 1024),
    )(x, we_p, be_p, wst, bst, eps_p, wd1_p, bd1_p)

    # ---- kernel 2: decoder output layer; Wd2 tile resident across M tiles ----
    recon_p = pl.pallas_call(
        _decoder_kernel,
        out_shape=jax.ShapeDtypeStruct((Mp, Dp), out_dtype),
        grid=(n_d, n_m),
        in_specs=[
            pl.BlockSpec((tile_m, Hh), lambda j, i: (i, 0)),      # h2
            pl.BlockSpec((Hh, td), lambda j, i: (0, j)),          # Wd2 tile
            pl.BlockSpec((1, td), lambda j, i: (0, j)),           # bd2 tile
        ],
        out_specs=pl.BlockSpec((tile_m, td), lambda j, i: (i, j)),
        compiler_params=pltpu.CompilerParams(
            dimension_semantics=("parallel", "parallel"),
            vmem_limit_bytes=32 * 1024 * 1024),
    )(h2, wd2_p, bd2_p)

    recon = recon_p[:B, :D].reshape(x_img.shape)
    mu = stats[:B, :L]
    logvar = stats[:B, L:2 * L]
    return recon, mu, logvar


def init_params(key, d_in, d_hidden, d_latent):
    """Kaiming-normal fan_in init (a=0) for all Linear weights, zero biases,
    matching BaseVAE.init_weights(init_type='kaiming')."""
    def kaiming(k, fan_in, fan_out):
        std = jnp.sqrt(2.0 / fan_in)
        return jax.random.normal(k, (fan_in, fan_out), dtype=jnp.float32) * std

    ks = jax.random.split(key, 5)
    we = kaiming(ks[0], d_in, d_hidden)
    be = jnp.zeros((d_hidden,), jnp.float32)
    wmu = kaiming(ks[1], d_hidden, d_latent)
    bmu = jnp.zeros((d_latent,), jnp.float32)
    wlv = kaiming(ks[2], d_hidden, d_latent)
    blv = jnp.zeros((d_latent,), jnp.float32)
    wd1 = kaiming(ks[3], d_latent, d_hidden)
    bd1 = jnp.zeros((d_hidden,), jnp.float32)
    wd2 = kaiming(ks[4], d_hidden, d_in)
    bd2 = jnp.zeros((d_in,), jnp.float32)
    return (we, be, wmu, bmu, wlv, blv, wd1, bd1, wd2, bd2)


def _reference(x_img, params, eps):
    """Pure-JAX reference with the same bf16 matmul operands / f32 accum."""
    (we, be, wmu, bmu, wlv, blv, wd1, bd1, wd2, bd2) = params
    f32, bf16 = jnp.float32, jnp.bfloat16
    B = x_img.shape[0]
    x = x_img.reshape(B, -1)
    h = jnp.maximum(jnp.dot(x.astype(bf16), we.astype(bf16),
                            preferred_element_type=f32) + be, 0.0)
    hb = h.astype(bf16)
    mu = jnp.dot(hb, wmu.astype(bf16), preferred_element_type=f32) + bmu
    logvar = jnp.dot(hb, wlv.astype(bf16), preferred_element_type=f32) + blv
    z = mu + jnp.exp(0.5 * logvar) * eps
    h2 = jnp.maximum(jnp.dot(z.astype(bf16), wd1.astype(bf16),
                             preferred_element_type=f32) + bd1, 0.0)
    recon = jnp.dot(h2.astype(bf16), wd2.astype(bf16),
                    preferred_element_type=f32) + bd2
    return recon.reshape(x_img.shape), mu, logvar


if __name__ == "__main__":
    key = jax.random.PRNGKey(0)
    k_x, k_p, k_eps = jax.random.split(key, 3)

    B, C, Hs, Ws = 2, 4, 16, 16          # NCHW, small
    D_IN = C * Hs * Ws                    # 1024
    D_HID = 128
    D_LAT = 32

    x = jax.random.normal(k_x, (B, C, Hs, Ws), dtype=jnp.float32)
    params = init_params(k_p, D_IN, D_HID, D_LAT)
    eps = jax.random.normal(k_eps, (B, D_LAT), dtype=jnp.float32)

    # One-time weight packing (hoisted out of the per-call forward).
    packed = prepare_params(params, D_IN)
    packed = jax.block_until_ready(packed)

    fwd = jax.jit(vae_forward)
    recon, mu, logvar = fwd(x, packed, eps)
    jax.block_until_ready((recon, mu, logvar))

    assert recon.shape == x.shape
    assert mu.shape == (B, D_LAT) and logvar.shape == (B, D_LAT)

    r_ref, mu_ref, lv_ref = _reference(x, params, eps)
    np.testing.assert_allclose(np.asarray(mu), np.asarray(mu_ref),
                               rtol=5e-2, atol=1e-1)
    np.testing.assert_allclose(np.asarray(logvar), np.asarray(lv_ref),
                               rtol=5e-2, atol=1e-1)
    np.testing.assert_allclose(np.asarray(recon.astype(jnp.float32)),
                               np.asarray(r_ref), rtol=5e-2, atol=1e-1)

    print("KERNEL_OK")
</pallas_src>

<mosaic_0001>
module attributes {stable_mosaic.version = 11 : i64} {
  func.func @_encoder_kernel(%arg0: i32, %arg1: i32, %arg2: memref<8x1024xf32, #tpu.memory_space<vmem>>, %arg3: memref<1024x128xbf16, #tpu.memory_space<vmem>>, %arg4: memref<1x128xf32, #tpu.memory_space<vmem>>, %arg5: memref<128x128xbf16, #tpu.memory_space<vmem>>, %arg6: memref<1x128xf32, #tpu.memory_space<vmem>>, %arg7: memref<8x128xf32, #tpu.memory_space<vmem>>, %arg8: memref<128x128xbf16, #tpu.memory_space<vmem>>, %arg9: memref<1x128xf32, #tpu.memory_space<vmem>>, %arg10: memref<8x128xf32, #tpu.memory_space<vmem>>, %arg11: memref<8x128xbf16, #tpu.memory_space<vmem>>, %arg12: memref<8x128xf32, #tpu.memory_space<vmem>>) attributes {dimension_semantics = [#tpu.dimension_semantics<parallel>, #tpu.dimension_semantics<arbitrary>], iteration_bounds = array<i64: 1, 1>, scalar_prefetch = 0 : i64, scratch_operands = 1 : i64, tpu.core_type = #tpu.core_type<tc>, window_params = [{transform_indices = @transform_0, window_bounds = array<i64: 8, 1024>}, {transform_indices = @transform_1, window_bounds = array<i64: 1024, 128>}, {pipeline_mode = #tpu.pipeline_mode<synchronous>, transform_indices = @transform_2, window_bounds = array<i64: 1, 128>}, {pipeline_mode = #tpu.pipeline_mode<synchronous>, transform_indices = @transform_3, window_bounds = array<i64: 128, 128>}, {pipeline_mode = #tpu.pipeline_mode<synchronous>, transform_indices = @transform_4, window_bounds = array<i64: 1, 128>}, {transform_indices = @transform_5, window_bounds = array<i64: 8, 128>}, {pipeline_mode = #tpu.pipeline_mode<synchronous>, transform_indices = @transform_6, window_bounds = array<i64: 128, 128>}, {pipeline_mode = #tpu.pipeline_mode<synchronous>, transform_indices = @transform_7, window_bounds = array<i64: 1, 128>}, {transform_indices = @transform_8, window_bounds = array<i64: 8, 128>}, {transform_indices = @transform_9, window_bounds = array<i64: 8, 128>}]} {
    %c0_i32 = arith.constant 0 : i32
    %0 = arith.cmpi eq, %arg1, %c0_i32 : i32
    %1 = arith.extui %0 : i1 to i32
    %c0_i32_0 = arith.constant 0 : i32
    %2 = arith.cmpi ne, %1, %c0_i32_0 : i32
    scf.if %2 {
      %cst_10 = arith.constant 0.000000e+00 : f32
      %13 = vector.broadcast %cst_10 : f32 to vector<8x128xf32>
      %c0_11 = arith.constant 0 : index
      %c0_12 = arith.constant 0 : index
      %14 = vector.load %arg12[%c0_11, %c0_12] : memref<8x128xf32, #tpu.memory_space<vmem>>, vector<8x128xf32>
      tpu.vector_store %arg12[%c0_11, %c0_12], %13 {strides = array<i32>} : memref<8x128xf32, #tpu.memory_space<vmem>>, vector<8x128xf32>,
    } else {
    }
    %c0 = arith.constant 0 : index
    %c0_1 = arith.constant 0 : index
    %3 = vector.load %arg12[%c0, %c0_1] : memref<8x128xf32, #tpu.memory_space<vmem>>, vector<8x128xf32>
    %c0_2 = arith.constant 0 : index
    %c0_3 = arith.constant 0 : index
    %4 = vector.load %arg2[%c0_2, %c0_3] : memref<8x1024xf32, #tpu.memory_space<vmem>>, vector<8x1024xf32>
    %5 = arith.truncf %4 : vector<8x1024xf32> to vector<8x1024xbf16>
    %c0_4 = arith.constant 0 : index
    %c0_5 = arith.constant 0 : index
    %6 = vector.load %arg3[%c0_4, %c0_5] : memref<1024x128xbf16, #tpu.memory_space<vmem>>, vector<1024x128xbf16>
    %cst = arith.constant dense<0.000000e+00> : vector<8x128xf32>
    %7 = tpu.matmul %5, %6, %cst {dimension_numbers = #tpu.dot_dimension_numbers<[1], [0], [0], [1], [0, 0, 1, 1], [], []>} : vector<8x1024xbf16>, vector<1024x128xbf16>, vector<8x128xf32> -> vector<8x128xf32>
    %8 = arith.addf %3, %7 : vector<8x128xf32>
    %c0_6 = arith.constant 0 : index
    %c0_7 = arith.constant 0 : index
    %9 = vector.load %arg12[%c0_6, %c0_7] : memref<8x128xf32, #tpu.memory_space<vmem>>, vector<8x128xf32>
    tpu.vector_store %arg12[%c0_6, %c0_7], %8 {strides = array<i32>} : memref<8x128xf32, #tpu.memory_space<vmem>>, vector<8x128xf32>,
    %c0_i32_8 = arith.constant 0 : i32
    %10 = arith.cmpi eq, %arg1, %c0_i32_8 : i32
    %11 = arith.extui %10 : i1 to i32
    %c0_i32_9 = arith.constant 0 : i32
    %12 = arith.cmpi ne, %11, %c0_i32_9 : i32
    scf.if %12 {
      %c0_10 = arith.constant 0 : index
      %c0_11 = arith.constant 0 : index
      %13 = vector.load %arg12[%c0_10, %c0_11] : memref<8x128xf32, #tpu.memory_space<vmem>>, vector<8x128xf32>
      %c0_12 = arith.constant 0 : index
      %c0_13 = arith.constant 0 : index
      %14 = vector.load %arg4[%c0_12, %c0_13] : memref<1x128xf32, #tpu.memory_space<vmem>>, vector<1x128xf32>
      %15 = vector.broadcast %14 : vector<1x128xf32> to vector<8x128xf32>
      %16 = arith.addf %13, %15 : vector<8x128xf32>
      %cst_14 = arith.constant 0.000000e+00 : f32
      %17 = vector.broadcast %cst_14 : f32 to vector<8x128xf32>
      %18 = arith.maximumf %16, %17 : vector<8x128xf32>
      %19 = arith.truncf %18 : vector<8x128xf32> to vector<8x128xbf16>
      %c0_15 = arith.constant 0 : index
      %c0_16 = arith.constant 0 : index
      %20 = vector.load %arg5[%c0_15, %c0_16] : memref<128x128xbf16, #tpu.memory_space<vmem>>, vector<128x128xbf16>
      %cst_17 = arith.constant dense<0.000000e+00> : vector<8x128xf32>
      %21 = tpu.matmul %19, %20, %cst_17 {dimension_numbers = #tpu.dot_dimension_numbers<[1], [0], [0], [1], [0, 0, 1, 1], [], []>} : vector<8x128xbf16>, vector<128x128xbf16>, vector<8x128xf32> -> vector<8x128xf32>
      %c0_18 = arith.constant 0 : index
      %c0_19 = arith.constant 0 : index
      %22 = vector.load %arg6[%c0_18, %c0_19] : memref<1x128xf32, #tpu.memory_space<vmem>>, vector<1x128xf32>
      %23 = vector.broadcast %22 : vector<1x128xf32> to vector<8x128xf32>
      %24 = arith.addf %21, %23 : vector<8x128xf32>
      %c0_20 = arith.constant 0 : index
      %c0_21 = arith.constant 0 : index
      %25 = vector.load %arg10[%c0_20, %c0_21] : memref<8x128xf32, #tpu.memory_space<vmem>>, vector<8x128xf32>
      tpu.vector_store %arg10[%c0_20, %c0_21], %24 {strides = array<i32>} : memref<8x128xf32, #tpu.memory_space<vmem>>, vector<8x128xf32>,
      %26 = tpu.iota {dimensions = array<i32: 1>} : vector<8x128xi32>
      %c32_i32 = arith.constant 32 : i32
      %27 = vector.broadcast %c32_i32 : i32 to vector<8x128xi32>
      %28 = arith.cmpi slt, %26, %27 : vector<8x128xi32>
      %cst_22 = arith.constant 0.000000e+00 : f32
      %29 = vector.broadcast %cst_22 : f32 to vector<8x128xf32>
      %30 = arith.select %28, %24, %29 : vector<8x128xi1>, vector<8x128xf32>
      %c32_i32_23 = arith.constant 32 : i32
      %31 = vector.broadcast %c32_i32_23 : i32 to vector<8x128xi32>
      %32 = arith.cmpi sge, %26, %31 : vector<8x128xi32>
      %c64_i32 = arith.constant 64 : i32
      %33 = vector.broadcast %c64_i32 : i32 to vector<8x128xi32>
      %34 = arith.cmpi slt, %26, %33 : vector<8x128xi32>
      %35 = arith.andi %32, %34 : vector<8x128xi1>
      %cst_24 = arith.constant 0.000000e+00 : f32
      %36 = vector.broadcast %cst_24 : f32 to vector<8x128xf32>
      %37 = arith.select %35, %24, %36 : vector<8x128xi1>, vector<8x128xf32>
      %cst_25 = arith.constant 5.000000e-01 : f32
      %38 = vector.broadcast %cst_25 : f32 to vector<8x128xf32>
      %39 = arith.mulf %38, %37 : vector<8x128xf32>
      %40 = math.exp %39 : vector<8x128xf32>
      %c0_26 = arith.constant 0 : index
      %c0_27 = arith.constant 0 : index
      %41 = vector.load %arg7[%c0_26, %c0_27] : memref<8x128xf32, #tpu.memory_space<vmem>>, vector<8x128xf32>
      %42 = arith.mulf %40, %41 : vector<8x128xf32>
      %43 = arith.addf %30, %42 : vector<8x128xf32>
      %44 = arith.truncf %43 : vector<8x128xf32> to vector<8x128xbf16>
      %c0_28 = arith.constant 0 : index
      %c0_29 = arith.constant 0 : index
      %45 = vector.load %arg8[%c0_28, %c0_29] : memref<128x128xbf16, #tpu.memory_space<vmem>>, vector<128x128xbf16>
      %cst_30 = arith.constant dense<0.000000e+00> : vector<8x128xf32>
      %46 = tpu.matmul %44, %45, %cst_30 {dimension_numbers = #tpu.dot_dimension_numbers<[1], [0], [0], [1], [0, 0, 1, 1], [], []>} : vector<8x128xbf16>, vector<128x128xbf16>, vector<8x128xf32> -> vector<8x128xf32>
      %c0_31 = arith.constant 0 : index
      %c0_32 = arith.constant 0 : index
      %47 = vector.load %arg9[%c0_31, %c0_32] : memref<1x128xf32, #tpu.memory_space<vmem>>, vector<1x128xf32>
      %48 = vector.broadcast %47 : vector<1x128xf32> to vector<8x128xf32>
      %49 = arith.addf %46, %48 : vector<8x128xf32>
      %cst_33 = arith.constant 0.000000e+00 : f32
      %50 = vector.broadcast %cst_33 : f32 to vector<8x128xf32>
      %51 = arith.maximumf %49, %50 : vector<8x128xf32>
      %52 = arith.truncf %51 : vector<8x128xf32> to vector<8x128xbf16>
      %c0_34 = arith.constant 0 : index
      %c0_35 = arith.constant 0 : index
      %53 = vector.load %arg11[%c0_34, %c0_35] : memref<8x128xbf16, #tpu.memory_space<vmem>>, vector<8x128xbf16>
      tpu.vector_store %arg11[%c0_34, %c0_35], %52 {strides = array<i32>} : memref<8x128xbf16, #tpu.memory_space<vmem>>, vector<8x128xbf16>,
    } else {
    }
    return
  }
  func.func @transform_0(%arg0: i32, %arg1: i32) -> (i32, i32) {
    %c0_i32 = arith.constant 0 : i32
    return %arg0, %arg1 : i32, i32
  }
  func.func @transform_1(%arg0: i32, %arg1: i32) -> (i32, i32) {
    %c0_i32 = arith.constant 0 : i32
    %c0_i32_0 = arith.constant 0 : i32
    return %arg1, %c0_i32 : i32, i32
  }
  func.func @transform_2(%arg0: i32, %arg1: i32) -> (i32, i32) {
    %c0_i32 = arith.constant 0 : i32
    %c0_i32_0 = arith.constant 0 : i32
    %c0_i32_1 = arith.constant 0 : i32
    return %c0_i32, %c0_i32_0 : i32, i32
  }
  func.func @transform_3(%arg0: i32, %arg1: i32) -> (i32, i32) {
    %c0_i32 = arith.constant 0 : i32
    %c0_i32_0 = arith.constant 0 : i32
    %c0_i32_1 = arith.constant 0 : i32
    return %c0_i32, %c0_i32_0 : i32, i32
  }
  func.func @transform_4(%arg0: i32, %arg1: i32) -> (i32, i32) {
    %c0_i32 = arith.constant 0 : i32
    %c0_i32_0 = arith.constant 0 : i32
    %c0_i32_1 = arith.constant 0 : i32
    return %c0_i32, %c0_i32_0 : i32, i32
  }
  func.func @transform_5(%arg0: i32, %arg1: i32) -> (i32, i32) {
    %c0_i32 = arith.constant 0 : i32
    %c0_i32_0 = arith.constant 0 : i32
    return %arg0, %c0_i32 : i32, i32
  }
  func.func @transform_6(%arg0: i32, %arg1: i32) -> (i32, i32) {
    %c0_i32 = arith.constant 0 : i32
    %c0_i32_0 = arith.constant 0 : i32
    %c0_i32_1 = arith.constant 0 : i32
    return %c0_i32, %c0_i32_0 : i32, i32
  }
  func.func @transform_7(%arg0: i32, %arg1: i32) -> (i32, i32) {
    %c0_i32 = arith.constant 0 : i32
    %c0_i32_0 = arith.constant 0 : i32
    %c0_i32_1 = arith.constant 0 : i32
    return %c0_i32, %c0_i32_0 : i32, i32
  }
  func.func @transform_8(%arg0: i32, %arg1: i32) -> (i32, i32) {
    %c0_i32 = arith.constant 0 : i32
    %c0_i32_0 = arith.constant 0 : i32
    return %arg0, %c0_i32 : i32, i32
  }
  func.func @transform_9(%arg0: i32, %arg1: i32) -> (i32, i32) {
    %c0_i32 = arith.constant 0 : i32
    %c0_i32_0 = arith.constant 0 : i32
    return %arg0, %c0_i32 : i32, i32
  }
}

module attributes {stable_mosaic.version = 11 : i64} {
  func.func @_decoder_kernel(%arg0: i32, %arg1: i32, %arg2: memref<8x128xbf16, #tpu.memory_space<vmem>>, %arg3: memref<128x1024xbf16, #tpu.memory_space<vmem>>, %arg4: memref<1x1024xf32, #tpu.memory_space<vmem>>, %arg5: memref<8x1024xbf16, #tpu.memory_space<vmem>>) attributes {dimension_semantics = [#tpu.dimension_semantics<parallel>, #tpu.dimension_semantics<parallel>], iteration_bounds = array<i64: 1, 1>, scalar_prefetch = 0 : i64, scratch_operands = 0 : i64, tpu.core_type = #tpu.core_type<tc>, window_params = [{transform_indices = @transform_0, window_bounds = array<i64: 8, 128>}, {transform_indices = @transform_1, window_bounds = array<i64: 128, 1024>}, {transform_indices = @transform_2, window_bounds = array<i64: 1, 1024>}, {transform_indices = @transform_3, window_bounds = array<i64: 8, 1024>}]} {
    %c0 = arith.constant 0 : index
    %c0_0 = arith.constant 0 : index
    %0 = vector.load %arg2[%c0, %c0_0] : memref<8x128xbf16, #tpu.memory_space<vmem>>, vector<8x128xbf16>
    %c0_1 = arith.constant 0 : index
    %c0_2 = arith.constant 0 : index
    %1 = vector.load %arg3[%c0_1, %c0_2] : memref<128x1024xbf16, #tpu.memory_space<vmem>>, vector<128x1024xbf16>
    %cst = arith.constant dense<0.000000e+00> : vector<8x1024xf32>
    %2 = tpu.matmul %0, %1, %cst {dimension_numbers = #tpu.dot_dimension_numbers<[1], [0], [0], [1], [0, 0, 1, 1], [], []>} : vector<8x128xbf16>, vector<128x1024xbf16>, vector<8x1024xf32> -> vector<8x1024xf32>
    %c0_3 = arith.constant 0 : index
    %c0_4 = arith.constant 0 : index
    %3 = vector.load %arg4[%c0_3, %c0_4] : memref<1x1024xf32, #tpu.memory_space<vmem>>, vector<1x1024xf32>
    %4 = vector.broadcast %3 : vector<1x1024xf32> to vector<8x1024xf32>
    %5 = arith.addf %2, %4 : vector<8x1024xf32>
    %6 = arith.truncf %5 : vector<8x1024xf32> to vector<8x1024xbf16>
    %c0_5 = arith.constant 0 : index
    %c0_6 = arith.constant 0 : index
    %7 = vector.load %arg5[%c0_5, %c0_6] : memref<8x1024xbf16, #tpu.memory_space<vmem>>, vector<8x1024xbf16>
    tpu.vector_store %arg5[%c0_5, %c0_6], %6 {strides = array<i32>} : memref<8x1024xbf16, #tpu.memory_space<vmem>>, vector<8x1024xbf16>,
    return
  }
  func.func @transform_0(%arg0: i32, %arg1: i32) -> (i32, i32) {
    %c0_i32 = arith.constant 0 : i32
    %c0_i32_0 = arith.constant 0 : i32
    return %arg1, %c0_i32 : i32, i32
  }
  func.func @transform_1(%arg0: i32, %arg1: i32) -> (i32, i32) {
    %c0_i32 = arith.constant 0 : i32
    %c0_i32_0 = arith.constant 0 : i32
    return %c0_i32, %arg0 : i32, i32
  }
  func.func @transform_2(%arg0: i32, %arg1: i32) -> (i32, i32) {
    %c0_i32 = arith.constant 0 : i32
    %c0_i32_0 = arith.constant 0 : i32
    return %c0_i32, %arg0 : i32, i32
  }
  func.func @transform_3(%arg0: i32, %arg1: i32) -> (i32, i32) {
    %c0_i32 = arith.constant 0 : i32
    return %arg1, %arg0 : i32, i32
  }
}

</mosaic_0001>

<bundles_post_ra>
// kernel: vae_forward.3
= control target key start
LH: loop header
LB: loop body
LE: loop exit
PB: predicated region body
PF: predicated region fallthrough
CT: control target
= control target key end

     0   :  { %v719_v3 = vmov 0   ;;  %s960_s1 = inlined_call_operand.vmem [shape: bf16[128,1024], index: 1, kind: input, shape index: {}]   ;;  %s961_s0 = inlined_call_operand.vmem [shape: bf16[8,128], index: 0, kind: input, shape index: {}]   ;;  %s962_s2 = inlined_call_operand.vmem [shape: f32[1,1024], index: 2, kind: input, shape index: {}]   ;;  %s963_s3 = inlined_call_operand.vmem [shape: bf16[8,1024], index: 3, kind: output, shape index: {}]  }
   0x1   :  { %v72_v0 = vld [vmem:[%s960_s1 + $0x1c0] sm:$0xff]  ;;  %v73_v2 = vld [vmem:[%s960_s1 + $0x1c8] sm:$0xff]  ;;  %474 = vmatprep.mubr.bf16.mxu0 %v719_v3  ;;  %515 = vmatprep.mubr.bf16.mxu1 %v719_v3  ;;  %v74_v63 = vld [vmem:[%s960_s1 + $0x1d0] sm:$0xff] }
   0x2   :  { %v76_v1 = vld [vmem:[%s960_s1 + $0x1e0] sm:$0xff]  ;;  %v77_v5 = vld [vmem:[%s960_s1 + $0x1e8] sm:$0xff] }
   0x3   :  { %v703_v4 = vcombine.high %v72_v0, %v76_v1  ;;  %v702_v6 = vcombine.low %v72_v0, %v76_v1  ;;  %v64_v7 = vld [vmem:[%s960_s1 + $0x180] sm:$0xff]  ;;  %v705_v9 = vcombine.high %v73_v2, %v77_v5  ;;  %v704_v10 = vcombine.low %v73_v2, %v77_v5  ;;  %v65_v12 = vld [vmem:[%s960_s1 + $0x188] sm:$0xff]  ;;  %v78_v0 = vld [vmem:[%s960_s1 + $0x1f0] sm:$0xff] }
   0x4   :  { %v68_v8 = vld [vmem:[%s960_s1 + $0x1a0] sm:$0xff]  ;;  %v69_v13 = vld [vmem:[%s960_s1 + $0x1a8] sm:$0xff]  ;;  %v75_v1 = vld [vmem:[%s960_s1 + $0x1d8] sm:$0xff] }
   0x5   :  { %v695_v11 = vcombine.high %v64_v7, %v68_v8  ;;  %v56_v14 = vld [vmem:[%s960_s1 + $0x140] sm:$0xff]  ;;  %442 = vmatprep.subr.bf16.mxu0 %v703_v4  ;;  %v697_v15 = vcombine.high %v65_v12, %v69_v13  ;;  %v57_v17 = vld [vmem:[%s960_s1 + $0x148] sm:$0xff]  ;;  %483 = vmatprep.subr.bf16.mxu1 %v705_v9  ;;  %v694_v19 = vcombine.low %v64_v7, %v68_v8  ;;  %v79_v2 = vld [vmem:[%s960_s1 + $0x1f8] sm:$0xff] }
   0x6   :  { %v60_v16 = vld [vmem:[%s960_s1 + $0x160] sm:$0xff]  ;;  %v61_v18 = vld [vmem:[%s960_s1 + $0x168] sm:$0xff]  ;;  %443 = vmatpush1.bf16.msra.mxu0 %v702_v6  ;;  %484 = vmatpush1.bf16.msra.mxu1 %v704_v10  ;;  %v696_v20 = vcombine.low %v65_v12, %v69_v13  ;;  %v707_v6 = vcombine.high %v74_v63, %v78_v0  ;;  %v709_v7 = vcombine.high %v75_v1, %v79_v2  ;;  %v66_v8 = vld [vmem:[%s960_s1 + $0x190] sm:$0xff] }
   0x7   :  { %444 = vmatprep.subr.bf16.mxu0 %v695_v11  ;;  %v687_v21 = vcombine.high %v56_v14, %v60_v16  ;;  %485 = vmatprep.subr.bf16.mxu1 %v697_v15  ;;  %v689_v22 = vcombine.high %v57_v17, %v61_v18  ;;  %v48_v23 = vld [vmem:[%s960_s1 + $0x100] sm:$0xff]  ;;  %v49_v25 = vld [vmem:[%s960_s1 + $0x108] sm:$0xff]  ;;  %v686_v27 = vcombine.low %v56_v14, %v60_v16  ;;  %v70_v9 = vld [vmem:[%s960_s1 + $0x1b0] sm:$0xff] }
   0x8   :  { %v52_v24 = vld [vmem:[%s960_s1 + $0x120] sm:$0xff]  ;;  %v53_v26 = vld [vmem:[%s960_s1 + $0x128] sm:$0xff]  ;;  %v688_v28 = vcombine.low %v57_v17, %v61_v18  ;;  %v67_v10 = vld [vmem:[%s960_s1 + $0x198] sm:$0xff]  ;;  %v706_v13 = vcombine.low %v74_v63, %v78_v0  ;;  %v708_v14 = vcombine.low %v75_v1, %v79_v2  ;;  %v699_v15 = vcombine.high %v66_v8, %v70_v9 }
   0x9   :  { %v679_v29 = vcombine.high %v48_v23, %v52_v24  ;;  %v681_v30 = vcombine.high %v49_v25, %v53_v26  ;;  %v40_v31 = vld [vmem:[%s960_s1 + $0xc0] sm:$0xff]  ;;  %v41_v33 = vld [vmem:[%s960_s1 + $0xc8] sm:$0xff]  ;;  %v678_v35 = vcombine.low %v48_v23, %v52_v24  ;;  %v680_v36 = vcombine.low %v49_v25, %v53_v26  ;;  %v71_v11 = vld [vmem:[%s960_s1 + $0x1b8] sm:$0xff] }
   0xa   :  { %445 = vmatpush1.bf16.msra.mxu0 %v694_v19  ;;  %486 = vmatpush1.bf16.msra.mxu1 %v696_v20  ;;  %v44_v32 = vld [vmem:[%s960_s1 + $0xe0] sm:$0xff]  ;;  %v45_v34 = vld [vmem:[%s960_s1 + $0xe8] sm:$0xff]  ;;  %v701_v16 = vcombine.high %v67_v10, %v71_v11  ;;  %v58_v17 = vld [vmem:[%s960_s1 + $0x150] sm:$0xff]  ;;  %v82_v2 = vlaneseq }
   0xb   :  { %446 = vmatprep.subr.bf16.mxu0 %v687_v21  ;;  %487 = vmatprep.subr.bf16.mxu1 %v689_v22  ;;  %v671_v37 = vcombine.high %v40_v31, %v44_v32  ;;  %v673_v38 = vcombine.high %v41_v33, %v45_v34  ;;  %v32_v39 = vld [vmem:[%s960_s1 + $0x80] sm:$0xff]  ;;  %v33_v41 = vld [vmem:[%s960_s1 + $0x88] sm:$0xff]  ;;  %v670_v43 = vcombine.low %v40_v31, %v44_v32  ;;  %v62_v18 = vld [vmem:[%s960_s1 + $0x170] sm:$0xff] }
   0xc   :  { %v36_v40 = vld [vmem:[%s960_s1 + $0xa0] sm:$0xff]  ;;  %v37_v42 = vld [vmem:[%s960_s1 + $0xa8] sm:$0xff]  ;;  %v672_v44 = vcombine.low %v41_v33, %v45_v34  ;;  %v59_v19 = vld [vmem:[%s960_s1 + $0x158] sm:$0xff]  ;;  %v698_v21 = vcombine.low %v66_v8, %v70_v9  ;;  %v700_v22 = vcombine.low %v67_v10, %v71_v11  ;;  %v691_v23 = vcombine.high %v58_v17, %v62_v18 }
   0xd   :  { %v663_v45 = vcombine.high %v32_v39, %v36_v40  ;;  %v665_v46 = vcombine.high %v33_v41, %v37_v42  ;;  %v24_v47 = vld [vmem:[%s960_s1 + $0x40] sm:$0xff]  ;;  %v25_v49 = vld [vmem:[%s960_s1 + $0x48] sm:$0xff]  ;;  %v662_v51 = vcombine.low %v32_v39, %v36_v40  ;;  %v664_v52 = vcombine.low %v33_v41, %v37_v42  ;;  %v63_v20 = vld [vmem:[%s960_s1 + $0x178] sm:$0xff] }
   0xe   :  { %447 = vmatpush1.bf16.msra.mxu0 %v686_v27  ;;  %488 = vmatpush1.bf16.msra.mxu1 %v688_v28  ;;  %v28_v48 = vld [vmem:[%s960_s1 + $0x60] sm:$0xff]  ;;  %v29_v50 = vld [vmem:[%s960_s1 + $0x68] sm:$0xff]  ;;  %v693_v24 = vcombine.high %v59_v19, %v63_v20  ;;  %v50_v25 = vld [vmem:[%s960_s1 + $0x110] sm:$0xff] }
   0xf   :  { %448 = vmatprep.subr.bf16.mxu0 %v679_v29  ;;  %489 = vmatprep.subr.bf16.mxu1 %v681_v30  ;;  %v655_v53 = vcombine.high %v24_v47, %v28_v48  ;;  %v657_v54 = vcombine.high %v25_v49, %v29_v50  ;;  %v16_v55 = vld [vmem:[%s960_s1] sm:$0xff]  ;;  %v17_v57 = vld [vmem:[%s960_s1 + $0x8] sm:$0xff]  ;;  %v654_v59 = vcombine.low %v24_v47, %v28_v48  ;;  %v54_v26 = vld [vmem:[%s960_s1 + $0x130] sm:$0xff] }
  0x10   :  { %v20_v56 = vld [vmem:[%s960_s1 + $0x20] sm:$0xff]  ;;  %v21_v58 = vld [vmem:[%s960_s1 + $0x28] sm:$0xff]  ;;  %v656_v60 = vcombine.low %v25_v49, %v29_v50  ;;  %v51_v27 = vld [vmem:[%s960_s1 + $0x118] sm:$0xff]  ;;  %v690_v29 = vcombine.low %v58_v17, %v62_v18  ;;  %v692_v30 = vcombine.low %v59_v19, %v63_v20  ;;  %v683_v31 = vcombine.high %v50_v25, %v54_v26 }
  0x11   :  { %v647_v61 = vcombine.high %v16_v55, %v20_v56  ;;  %v649_v62 = vcombine.high %v17_v57, %v21_v58  ;;  %v646_v4 = vcombine.low %v16_v55, %v20_v56  ;;  %v648_v5 = vcombine.low %v17_v57, %v21_v58  ;;  %v865_v12 = vld [vmem:[%s961_s0] sm:$0xf]  ;;  %v55_v28 = vld [vmem:[%s960_s1 + $0x138] sm:$0xff]  ;;  %v42_v33 = vld [vmem:[%s960_s1 + $0xd0] sm:$0xff] }
  0x12   :  { %449 = vmatpush1.bf16.msra.mxu0 %v678_v35  ;;  %490 = vmatpush1.bf16.msra.mxu1 %v680_v36  ;;  %v685_v32 = vcombine.high %v51_v27, %v55_v28  ;;  %v46_v34 = vld [vmem:[%s960_s1 + $0xf0] sm:$0xff]  ;;  %v47_v35 = vld [vmem:[%s960_s1 + $0xf8] sm:$0xff]  ;;  %v682_v36 = vcombine.low %v50_v25, %v54_v26 }
  0x13   :  { %450 = vmatprep.subr.bf16.mxu0 %v671_v37  ;;  %491 = vmatprep.subr.bf16.mxu1 %v673_v38  ;;  %v684_v37 = vcombine.low %v51_v27, %v55_v28  ;;  %v675_v38 = vcombine.high %v42_v33, %v46_v34  ;;  %v34_v40 = vld [vmem:[%s960_s1 + $0x90] sm:$0xff]  ;;  %v35_v42 = vld [vmem:[%s960_s1 + $0x98] sm:$0xff] }
  0x14   :  { %v38_v41 = vld [vmem:[%s960_s1 + $0xb0] sm:$0xff]  ;;  %v27_v50 = vld [vmem:[%s960_s1 + $0x58] sm:$0xff] }
  0x15   :  { %v26_v48 = vld [vmem:[%s960_s1 + $0x50] sm:$0xff]  ;;  %v19_v58 = vld [vmem:[%s960_s1 + $0x18] sm:$0xff] }
  0x16   :  { %451 = vmatpush1.bf16.msra.mxu0 %v670_v43  ;;  %492 = vmatpush1.bf16.msra.mxu1 %v672_v44  ;;  %v39_v43 = vld [vmem:[%s960_s1 + $0xb8] sm:$0xff]  ;;  %v674_v44 = vcombine.low %v42_v33, %v46_v34  ;;  %v30_v49 = vld [vmem:[%s960_s1 + $0x70] sm:$0xff] }
  0x17   :  { %452 = vmatprep.subr.bf16.mxu0 %v663_v45  ;;  %493 = vmatprep.subr.bf16.mxu1 %v665_v46  ;;  %v667_v46 = vcombine.high %v34_v40, %v38_v41  ;;  %v669_v47 = vcombine.high %v35_v42, %v39_v43  ;;  %v18_v56 = vld [vmem:[%s960_s1 + $0x10] sm:$0xff] }
  0x18   :  { %v22_v57 = vld [vmem:[%s960_s1 + $0x30] sm:$0xff] }
  0x19   :  { %v650_v0 = vcombine.low %v18_v56, %v22_v57 }
  0x1a   :  { %453 = vmatpush1.bf16.msra.mxu0 %v662_v51  ;;  %494 = vmatpush1.bf16.msra.mxu1 %v664_v52  ;;  %v31_v51 = vld [vmem:[%s960_s1 + $0x78] sm:$0xff]  ;;  %v666_v52 = vcombine.low %v34_v40, %v38_v41 }
  0x1b   :  { %454 = vmatprep.subr.bf16.mxu0 %v655_v53  ;;  %495 = vmatprep.subr.bf16.mxu1 %v657_v54  ;;  %v668_v53 = vcombine.low %v35_v42, %v39_v43  ;;  %v659_v54 = vcombine.high %v26_v48, %v30_v49  ;;  %v661_v55 = vcombine.high %v27_v50, %v31_v51 }
  0x1e   :  { %455 = vmatpush1.bf16.msra.mxu0 %v654_v59  ;;  %496 = vmatpush1.bf16.msra.mxu1 %v656_v60  ;;  %v23_v59 = vld [vmem:[%s960_s1 + $0x38] sm:$0xff]  ;;  %v658_v60 = vcombine.low %v26_v48, %v30_v49 }
  0x1f   :  { %456 = vmatprep.subr.bf16.mxu0 %v647_v61  ;;  %497 = vmatprep.subr.bf16.mxu1 %v649_v62  ;;  %v660_v61 = vcombine.low %v27_v50, %v31_v51  ;;  %v651_v62 = vcombine.high %v18_v56, %v22_v57  ;;  %v653_v63 = vcombine.high %v19_v58, %v23_v59 }
  0x20   :  { %v652_v1 = vcombine.low %v19_v58, %v23_v59 }
  0x22   :  { %457 = vmatpush1.bf16.msra.mxu0 %v646_v4  ;;  %498 = vmatpush1.bf16.msra.mxu1 %v648_v5  ;;  %v83_v4 = vshrl.u32 %v82_v2, 7 }
  0x23   :  { %524 = vmatprep.subr.bf16.mxu0 %v707_v6  ;;  %565 = vmatprep.subr.bf16.mxu1 %v709_v7  ;;  %v80_v6 = vld [vmem:[%s962_s2] sm:$0xff] }
  0x24   :  { %v84_v5 = vsub.s32 0, %v83_v4  ;;  %v92_v7 = vsub.s32 2, %v83_v4  ;;  %v88_v8 = vsub.s32 1, %v83_v4  ;;  %v96_v9 = vsub.s32 3, %v83_v4 }
  0x25   :  { %475 = vmatmul.mubr.bf16.vlgmr.msra.gmra.mxu0 %v865_v12  ;;  %516 = vmatmul.mubr.bf16.vlgmr.msra.gmra.mxu1 %v865_v12  ;;  %v100_v28 = vsub.s32 4, %v83_v4 }
  0x26   :  { %525 = vmatpush1.bf16.msra.mxu0 %v706_v13  ;;  %566 = vmatpush1.bf16.msra.mxu1 %v708_v14  ;;  %v85_v10 = vrot.slane %v80_v6, %v84_v5  ;;  %v93_v11 = vrot.slane %v80_v6, %v92_v7  ;;  %v89_v13 = vrot.slane %v80_v6, %v88_v8 }
  0x27   :  { %526 = vmatprep.subr.bf16.mxu0 %v699_v15  ;;  %567 = vmatprep.subr.bf16.mxu1 %v701_v16  ;;  %v97_v15 = vrot.slane %v80_v6, %v96_v9 }
  0x28   :  { %556 = vmatprep.mubr.bf16.mxu0 %v719_v3  ;;  %597 = vmatprep.mubr.bf16.mxu1 %v719_v3  ;;  %v43_v3 = vld [vmem:[%s960_s1 + $0xd8] sm:$0xff] }
  0x29   :  { %v677_v39 = vcombine.high %v43_v3, %v47_v35  ;;  %v676_v45 = vcombine.low %v43_v3, %v47_v35 }
  0x2a   :  { %527 = vmatpush1.bf16.msra.mxu0 %v698_v21  ;;  %568 = vmatpush1.bf16.msra.mxu1 %v700_v22 }
  0x2b   :  { %528 = vmatprep.subr.bf16.mxu0 %v691_v23  ;;  %569 = vmatprep.subr.bf16.mxu1 %v693_v24 }
  0x2e   :  { %529 = vmatpush1.bf16.msra.mxu0 %v690_v29  ;;  %570 = vmatpush1.bf16.msra.mxu1 %v692_v30  ;;  %v104_v29 = vsub.s32 5, %v83_v4  ;;  %v108_v30 = vsub.s32 6, %v83_v4 }
  0x2f   :  { %530 = vmatprep.subr.bf16.mxu0 %v683_v31  ;;  %571 = vmatprep.subr.bf16.mxu1 %v685_v32  ;;  %v112_v31 = vsub.s32 7, %v83_v4  ;;  %v101_v32 = vrot.slane %v80_v6, %v100_v28 }
  0x30   :  { %v105_v33 = vrot.slane %v80_v6, %v104_v29  ;;  %v109_v3 = vrot.slane %v80_v6, %v108_v30 }
  0x31   :  { %v113_v35 = vrot.slane %v80_v6, %v112_v31 }
  0x32   :  { %531 = vmatpush1.bf16.msra.mxu0 %v682_v36  ;;  %572 = vmatpush1.bf16.msra.mxu1 %v684_v37 }
  0x33   :  { %532 = vmatprep.subr.bf16.mxu0 %v675_v38  ;;  %573 = vmatprep.subr.bf16.mxu1 %v677_v39 }
  0x36   :  { %533 = vmatpush1.bf16.msra.mxu0 %v674_v44  ;;  %574 = vmatpush1.bf16.msra.mxu1 %v676_v45 }
  0x37   :  { %534 = vmatprep.subr.bf16.mxu0 %v667_v46  ;;  %575 = vmatprep.subr.bf16.mxu1 %v669_v47 }
  0x3a   :  { %535 = vmatpush1.bf16.msra.mxu0 %v666_v52  ;;  %576 = vmatpush1.bf16.msra.mxu1 %v668_v53 }
  0x3b   :  { %536 = vmatprep.subr.bf16.mxu0 %v659_v54  ;;  %577 = vmatprep.subr.bf16.mxu1 %v661_v55 }
  0x3e   :  { %537 = vmatpush1.bf16.msra.mxu0 %v658_v60  ;;  %578 = vmatpush1.bf16.msra.mxu1 %v660_v61 }
  0x3f   :  { %538 = vmatprep.subr.bf16.mxu0 %v651_v62  ;;  %579 = vmatprep.subr.bf16.mxu1 %v653_v63 }
  0x42   :  { %539 = vmatpush1.bf16.msra.mxu0 %v650_v0  ;;  %580 = vmatpush1.bf16.msra.mxu1 %v652_v1 }
  0x45   :  { %557 = vmatmul.mubr.bf16.vlgmr.msra.gmra.mxu0 %v865_v12  ;;  %598 = vmatmul.mubr.bf16.vlgmr.msra.gmra.mxu1 %v865_v12 }
  0xe5   :  { %v476_v14 = vpop.f32.mrf.mxu0  ;;  %v517_v17 = vpop.f32.mrf.mxu1 }
  0xe6   :  { %v477_v16 = vadd.f32 %v476_v14, %v85_v10  ;;  %v518_v18 = vadd.f32 %v517_v17, %v93_v11 }
  0xe7   :  { %v478_v19 = vpop.f32.mrf.mxu0  ;;  %v519_v20 = vpop.f32.mrf.mxu1 }
  0xe8   :  { %v479_v12 = vadd.f32 %v478_v19, %v89_v13  ;;  %v520_v21 = vadd.f32 %v519_v20, %v97_v15 }
  0xe9   :  { %v480_v22 = vpop.f32.mrf.mxu0  ;;  %v521_v24 = vpop.f32.mrf.mxu1 }
  0xea   :  { %v714_v23 = vpack.c.bf16 %v479_v12, %v477_v16  ;;  %v715_v25 = vpack.c.bf16 %v520_v21, %v518_v18 }
  0xeb   :  { %v481_v26 = vpop.f32.mrf.mxu0  ;;  %v522_v27 = vpop.f32.mrf.mxu1 }
  0xec   :  { %638 = vst [vmem:[%s963_s3] sm:$0xff] %v714_v23  ;;  %639 = vst [vmem:[%s963_s3 + $0x8] sm:$0xff] %v715_v25 }
 0x105   :  { %v558_v34 = vpop.f32.mrf.mxu0  ;;  %v599_v36 = vpop.f32.mrf.mxu1 }
 0x106   :  { %v559_v38 = vadd.f32 %v558_v34, %v101_v32  ;;  %v600_v41 = vadd.f32 %v599_v36, %v109_v3 }
 0x107   :  { %v560_v37 = vpop.f32.mrf.mxu0  ;;  %v601_v40 = vpop.f32.mrf.mxu1 }
 0x108   :  { %v561_v39 = vadd.f32 %v560_v37, %v105_v33  ;;  %v602_v42 = vadd.f32 %v601_v40, %v113_v35 }
 0x109   :  { %v562_v43 = vpop.f32.mrf.mxu0  ;;  %v603_v45 = vpop.f32.mrf.mxu1 }
 0x10a   :  { %v716_v44 = vpack.c.bf16 %v561_v39, %v559_v38  ;;  %v717_v46 = vpack.c.bf16 %v602_v42, %v600_v41 }
 0x10b   :  { %v563_v47 = vpop.f32.mrf.mxu0  ;;  %v604_v48 = vpop.f32.mrf.mxu1 }
 0x10c   :  { %640 = vst [vmem:[%s963_s3 + $0x10] sm:$0xff] %v716_v44  ;;  %641 = vst [vmem:[%s963_s3 + $0x18] sm:$0xff] %v717_v46 }

// kernel: vae_forward.2
= control target key start
LH: loop header
LB: loop body
LE: loop exit
PB: predicated region body
PF: predicated region fallthrough
CT: control target
= control target key end

     0   :  { %15 = vsyncpa [#allocation4], 0  ;;  %s1344_s30 = smov [#allocation3]   ;;  %s1510_s0 = inlined_call_operand.vmem [shape: f32[8,1024], index: 0, kind: input, shape index: {}]   ;;  %s1511_s1 = inlined_call_operand.hbm [shape: bf16[1024,128], index: 1, kind: input, shape index: {}]   ;;  %s1512_s2 = inlined_call_operand.vmem [shape: f32[1,128], index: 2, kind: input, shape index: {}]   ;;  %s1513_s3 = inlined_call_operand.vmem [shape: bf16[128,128], index: 3, kind: input, shape index: {}]   ;;  %s1514_s4 = inlined_call_operand.vmem [shape: f32[1,128], index: 4, kind: input, shape index: {}]   ;;  %s1515_s5 = inlined_call_operand.vmem [shape: f32[8,128], index: 5, kind: input, shape index: {}]   ;;  %s1516_s6 = inlined_call_operand.vmem [shape: bf16[128,128], index: 6, kind: input, shape index: {}]   ;;  %s1517_s7 = inlined_call_operand.vmem [shape: f32[1,128], index: 7, kind: input, shape index: {}]   ;;  %s1518_s8 = inlined_call_operand.vmem [shape: f32[8,128], index: 8, kind: output, shape index: {0}]   ;;  %s1519_s9 = inlined_call_operand.vmem [shape: bf16[8,128], index: 9, kind: output, shape index: {1}]  }
   0x1   :  { %s23_s10 = sshll.u32 %s1344_s30, 4  ;;  %s24_s10 = int_to_ptr.vmem [resolvable:$true] %s23_s10 }
   0x2   :  { %s1330_s11 = scalar_lea.vmem %s24_s10, 8192  ;;  %p1335_p1 = scmp.lt.s32.totalorder %s24_s10, %s24_s10 }
   0x3   :  { %p1331_p0 = scmp.ne.s32.totalorder %s24_s10, %s1330_s11  ;;  %p1336_p2 = scmp.lt.s32.totalorder %s1330_s11, %s1330_s11 }
   0x5   :  { %p1337_p3 = por %p1336_p2, %p1335_p1 }
   0x7   :  { %p1338_p4 = pnand %p1337_p3, %p1331_p0 }
   0x9   :  { %1341 = shalt.err (!%p1338_p4)
}
   0xa   :  { %s1345_s12 = smov 64   ;;  %s1346_s13 = smov 4  }
   0xb   :  { %29 = dma.hbm_to_vmem [thread:$0]  %s1511_s1, 8192, %s24_s10, [#allocation4], %s1345_s12, %s1345_s12, %s1346_s13  }
   0xc   :  { %1342 = dma.done.wait [#allocation4], 8192  }
   0xd   :  { %1343 = vsyncadd [#allocation4], 4294959104  ;;  %v1240_v0 = vld [vmem:[#allocation3 + $0x78] sm:$0xff]   ;;  %v1244_v4 = vld [vmem:[#allocation3 + $0x70] sm:$0xff]   ;;  %vm1348_vm0 = vmmov 0  }
   0xe   :  { %v1241_v1 = vld [vmem:[#allocation3 + $0xf8] sm:$0xff]   ;;  %1089 = vmatprep.subr.bf16.mxu0 %v1240_v0  ;;  %v1245_v5 = vld [vmem:[#allocation3 + $0xf0] sm:$0xff]   ;;  %v1248_v8 = vld [vmem:[#allocation3 + $0x68] sm:$0xff]  }
   0xf   :  { %v1242_v2 = vld [vmem:[#allocation3 + $0x38] sm:$0xff]   ;;  %1111 = vmatprep.subr.bf16.mxu1 %v1241_v1  ;;  %v1246_v6 = vld [vmem:[#allocation3 + $0x30] sm:$0xff]   ;;  %v1249_v9 = vld [vmem:[#allocation3 + $0xe8] sm:$0xff]  }
  0x10   :  { %v1243_v3 = vld [vmem:[#allocation3 + $0xb8] sm:$0xff]   ;;  %1090 = vmatpush3.bf16.msra.mxu0 %v1242_v2  ;;  %v1247_v7 = vld [vmem:[#allocation3 + $0xb0] sm:$0xff]   ;;  %v1250_v10 = vld [vmem:[#allocation3 + $0x28] sm:$0xff]  }
  0x11   :  { %1112 = vmatpush3.bf16.msra.mxu1 %v1243_v3  ;;  %1091 = vmatprep.subr.bf16.mxu0 %v1244_v4  ;;  %v1251_v11 = vld [vmem:[#allocation3 + $0xa8] sm:$0xff]   ;;  %v1252_v12 = vld [vmem:[#allocation3 + $0x60] sm:$0xff]   ;;  %v1256_v16 = vld [vmem:[#allocation3 + $0x58] sm:$0xff]  }
  0x12   :  { %1113 = vmatprep.subr.bf16.mxu1 %v1245_v5  ;;  %v1253_v13 = vld [vmem:[#allocation3 + $0xe0] sm:$0xff]   ;;  %v1257_v17 = vld [vmem:[#allocation3 + $0xd8] sm:$0xff]   ;;  %v1260_v20 = vld [vmem:[#allocation3 + $0x50] sm:$0xff]  }
  0x13   :  { %v1254_v14 = vld [vmem:[#allocation3 + $0x20] sm:$0xff]   ;;  %v1258_v18 = vld [vmem:[#allocation3 + $0x18] sm:$0xff]   ;;  %v1261_v21 = vld [vmem:[#allocation3 + $0xd0] sm:$0xff]  }
  0x14   :  { %1092 = vmatpush3.bf16.msra.mxu0 %v1246_v6  ;;  %v1255_v15 = vld [vmem:[#allocation3 + $0xa0] sm:$0xff]   ;;  %v1259_v19 = vld [vmem:[#allocation3 + $0x98] sm:$0xff]   ;;  %v1262_v22 = vld [vmem:[#allocation3 + $0x10] sm:$0xff]  }
  0x15   :  { %1114 = vmatpush3.bf16.msra.mxu1 %v1247_v7  ;;  %1093 = vmatprep.subr.bf16.mxu0 %v1248_v8  ;;  %v1263_v23 = vld [vmem:[#allocation3 + $0x90] sm:$0xff]   ;;  %v1264_v24 = vld [vmem:[#allocation3 + $0x48] sm:$0xff]   ;;  %v1268_v28 = vld [vmem:[#allocation3 + $0x40] sm:$0xff]  }
  0x16   :  { %1115 = vmatprep.subr.bf16.mxu1 %v1249_v9  ;;  %v1265_v25 = vld [vmem:[#allocation3 + $0xc8] sm:$0xff]   ;;  %v1269_v29 = vld [vmem:[#allocation3 + $0xc0] sm:$0xff]   ;;  %v55_v33 = vld [vmem:[%s1510_s0 + $0x18] sm:$0xff] }
  0x17   :  { %v1266_v26 = vld [vmem:[#allocation3 + $0x8] sm:$0xff]   ;;  %v1270_v30 = vld [vmem:[#allocation3] sm:$0xff]   ;;  %v63_v36 = vpack.c.bf16 %v55_v33, %v55_v33  ;;  %v54_v38 = vld [vmem:[%s1510_s0 + $0x10] sm:$0xff] }
  0x18   :  { %1094 = vmatpush3.bf16.msra.mxu0 %v1250_v10  ;;  %v1267_v27 = vld [vmem:[#allocation3 + $0x88] sm:$0xff]   ;;  %v1271_v31 = vld [vmem:[#allocation3 + $0x80] sm:$0xff]   ;;  %v62_v39 = vpack.c.bf16 %v54_v38, %v54_v38  ;;  %v1272_v40 = vld [vmem:[#allocation3 + $0x178] sm:$0xff]  }
  0x19   :  { %1116 = vmatpush3.bf16.msra.mxu1 %v1251_v11  ;;  %1095 = vmatprep.subr.bf16.mxu0 %v1252_v12  ;;  %v53_v32 = vld [vmem:[%s1510_s0 + $0x8] sm:$0xff]  ;;  %v52_v34 = vld [vmem:[%s1510_s0] sm:$0xff]  ;;  %v1273_v41 = vld [vmem:[#allocation3 + $0x1f8] sm:$0xff]  }
  0x1a   :  { %1117 = vmatprep.subr.bf16.mxu1 %v1253_v13  ;;  %v61_v35 = vpack.c.bf16 %v53_v32, %v53_v32  ;;  %v60_v37 = vpack.c.bf16 %v52_v34, %v52_v34  ;;  %652 = vmatprep.mubr.bf16.mxu1 %v63_v36  ;;  %v1274_v42 = vld [vmem:[#allocation3 + $0x138] sm:$0xff]   ;;  %v1276_v44 = vld [vmem:[#allocation3 + $0x170] sm:$0xff]   ;;  %v1280_v48 = vld [vmem:[#allocation3 + $0x168] sm:$0xff]  }
  0x1b   :  { %v1275_v43 = vld [vmem:[#allocation3 + $0x1b8] sm:$0xff]   ;;  %v1277_v45 = vld [vmem:[#allocation3 + $0x1f0] sm:$0xff]   ;;  %v1281_v49 = vld [vmem:[#allocation3 + $0x1e8] sm:$0xff]  }
  0x1c   :  { %1096 = vmatpush3.bf16.msra.mxu0 %v1254_v14  ;;  %612 = vmatprep.mubr.bf16.mxu0 %v61_v35  ;;  %v1278_v46 = vld [vmem:[#allocation3 + $0x130] sm:$0xff]   ;;  %v1282_v50 = vld [vmem:[#allocation3 + $0x128] sm:$0xff]   ;;  %v1284_v52 = vld [vmem:[#allocation3 + $0x160] sm:$0xff]  }
  0x1d   :  { %1118 = vmatpush3.bf16.msra.mxu1 %v1255_v15  ;;  %1097 = vmatprep.subr.bf16.mxu0 %v1256_v16  ;;  %v1279_v47 = vld [vmem:[#allocation3 + $0x1b0] sm:$0xff]   ;;  %v1283_v51 = vld [vmem:[#allocation3 + $0x1a8] sm:$0xff]   ;;  %v1285_v53 = vld [vmem:[#allocation3 + $0x1e0] sm:$0xff]  }
  0x1e   :  { %1119 = vmatprep.subr.bf16.mxu1 %v1257_v17  ;;  %v1286_v54 = vld [vmem:[#allocation3 + $0x120] sm:$0xff]   ;;  %v1288_v56 = vld [vmem:[#allocation3 + $0x158] sm:$0xff]   ;;  %v1292_v60 = vld [vmem:[#allocation3 + $0x150] sm:$0xff]   ;;  %v1347_v17 = vmov 0.0  }
  0x1f   :  { %v1287_v55 = vld [vmem:[#allocation3 + $0x1a0] sm:$0xff]   ;;  %v1289_v57 = vld [vmem:[#allocation3 + $0x1d8] sm:$0xff]   ;;  %v1293_v61 = vld [vmem:[#allocation3 + $0x1d0] sm:$0xff]  }
  0x20   :  { %1098 = vmatpush3.bf16.msra.mxu0 %v1258_v18  ;;  %v1290_v58 = vld [vmem:[#allocation3 + $0x118] sm:$0xff]   ;;  %v1294_v62 = vld [vmem:[#allocation3 + $0x110] sm:$0xff]   ;;  %v1296_v0 = vld [vmem:[#allocation3 + $0x148] sm:$0xff]  }
  0x21   :  { %1120 = vmatpush3.bf16.msra.mxu1 %v1259_v19  ;;  %1099 = vmatprep.subr.bf16.mxu0 %v1260_v20  ;;  %v1291_v59 = vld [vmem:[#allocation3 + $0x198] sm:$0xff]   ;;  %v1295_v63 = vld [vmem:[#allocation3 + $0x190] sm:$0xff]   ;;  %v1297_v1 = vld [vmem:[#allocation3 + $0x1c8] sm:$0xff]  }
  0x22   :  { %1121 = vmatprep.subr.bf16.mxu1 %v1261_v21  ;;  %v1298_v2 = vld [vmem:[#allocation3 + $0x108] sm:$0xff]   ;;  %v1300_v4 = vld [vmem:[#allocation3 + $0x140] sm:$0xff]   ;;  %v59_v9 = vld [vmem:[%s1510_s0 + $0x38] sm:$0xff] }
  0x23   :  { %v1299_v3 = vld [vmem:[#allocation3 + $0x188] sm:$0xff]   ;;  %v1301_v5 = vld [vmem:[#allocation3 + $0x1c0] sm:$0xff]   ;;  %v67_v11 = vpack.c.bf16 %v59_v9, %v59_v9  ;;  %v58_v13 = vld [vmem:[%s1510_s0 + $0x30] sm:$0xff] }
  0x24   :  { %1100 = vmatpush3.bf16.msra.mxu0 %v1262_v22  ;;  %v1302_v6 = vld [vmem:[#allocation3 + $0x100] sm:$0xff]   ;;  %v57_v8 = vld [vmem:[%s1510_s0 + $0x28] sm:$0xff]  ;;  %v66_v15 = vpack.c.bf16 %v58_v13, %v58_v13  ;;  %v1304_v16 = vld [vmem:[%s1513_s3 + $0x38] sm:$0xff]  }
  0x25   :  { %1122 = vmatpush3.bf16.msra.mxu1 %v1263_v23  ;;  %1101 = vmatprep.subr.bf16.mxu0 %v1264_v24  ;;  %v1303_v7 = vld [vmem:[#allocation3 + $0x180] sm:$0xff]   ;;  %v65_v10 = vpack.c.bf16 %v57_v8, %v57_v8  ;;  %v1305_v18 = vld [vmem:[%s1513_s3 + $0x30] sm:$0xff]   ;;  %v1306_v19 = vld [vmem:[%s1513_s3 + $0x28] sm:$0xff]  }
  0x26   :  { %1123 = vmatprep.subr.bf16.mxu1 %v1265_v25  ;;  %v56_v12 = vld [vmem:[%s1510_s0 + $0x20] sm:$0xff]  ;;  %v1308_v21 = vld [vmem:[%s1513_s3 + $0x18] sm:$0xff]   ;;  %v1309_v22 = vld [vmem:[%s1513_s3 + $0x10] sm:$0xff]  }
  0x27   :  { %v64_v14 = vpack.c.bf16 %v56_v12, %v56_v12  ;;  %v1307_v20 = vld [vmem:[%s1513_s3 + $0x20] sm:$0xff]   ;;  %v1310_v23 = vld [vmem:[%s1513_s3 + $0x8] sm:$0xff]   ;;  %v1312_v25 = vld [vmem:[%s1516_s6 + $0x38] sm:$0xff]  }
  0x28   :  { %1102 = vmatpush3.bf16.msra.mxu0 %v1266_v26  ;;  %v1311_v24 = vld [vmem:[%s1513_s3] sm:$0xff]  }
  0x29   :  { %1124 = vmatpush3.bf16.msra.mxu1 %v1267_v27  ;;  %1103 = vmatprep.subr.bf16.mxu0 %v1268_v28  ;;  %v1080_v13 = vld [vmem:[%s1517_s7] ss:$0 sm:$0xff] }
  0x2a   :  { %1125 = vmatprep.subr.bf16.mxu1 %v1269_v29 }
  0x2c   :  { %1104 = vmatpush3.bf16.msra.mxu0 %v1270_v30 }
  0x2d   :  { %1126 = vmatpush3.bf16.msra.mxu1 %v1271_v31  ;;  %1133 = vmatprep.subr.bf16.mxu0 %v1272_v40 }
  0x2e   :  { %1155 = vmatprep.subr.bf16.mxu1 %v1273_v41 }
  0x2f   :  { %613 = vmatmul.mubr.bf16.vlgmr.msra.gmra.mxu0 %v60_v37 }
  0x30   :  { %653 = vmatmul.mubr.bf16.vlgmr.msra.gmra.mxu1 %v62_v39  ;;  %1134 = vmatpush3.bf16.msra.mxu0 %v1274_v42 }
  0x31   :  { %1156 = vmatpush3.bf16.msra.mxu1 %v1275_v43  ;;  %1135 = vmatprep.subr.bf16.mxu0 %v1276_v44 }
  0x32   :  { %1157 = vmatprep.subr.bf16.mxu1 %v1277_v45  ;;  %692 = vmatprep.mubr.bf16.mxu0 %v65_v10 }
  0x33   :  { %732 = vmatprep.mubr.bf16.mxu1 %v67_v11 }
  0x34   :  { %1136 = vmatpush3.bf16.msra.mxu0 %v1278_v46  ;;  %v1070_v46 = vld [vmem:[%s1512_s2] ss:$0 sm:$0xff] }
  0x35   :  { %1158 = vmatpush3.bf16.msra.mxu1 %v1279_v47  ;;  %1137 = vmatprep.subr.bf16.mxu0 %v1280_v48 }
  0x36   :  { %1159 = vmatprep.subr.bf16.mxu1 %v1281_v49 }
  0x38   :  { %1138 = vmatpush3.bf16.msra.mxu0 %v1282_v50 }
  0x39   :  { %1160 = vmatpush3.bf16.msra.mxu1 %v1283_v51  ;;  %1139 = vmatprep.subr.bf16.mxu0 %v1284_v52 }
  0x3a   :  { %1161 = vmatprep.subr.bf16.mxu1 %v1285_v53  ;;  %v1313_v53 = vld [vmem:[%s1516_s6 + $0x30] sm:$0xff]  }
  0x3c   :  { %1140 = vmatpush3.bf16.msra.mxu0 %v1286_v54  ;;  %v1314_v54 = vld [vmem:[%s1516_s6 + $0x28] sm:$0xff]  }
  0x3d   :  { %1162 = vmatpush3.bf16.msra.mxu1 %v1287_v55  ;;  %1141 = vmatprep.subr.bf16.mxu0 %v1288_v56  ;;  %v1315_v55 = vld [vmem:[%s1516_s6 + $0x20] sm:$0xff]   ;;  %v1316_v56 = vld [vmem:[%s1516_s6 + $0x18] sm:$0xff]  }
  0x3e   :  { %1163 = vmatprep.subr.bf16.mxu1 %v1289_v57  ;;  %v1317_v57 = vld [vmem:[%s1516_s6 + $0x10] sm:$0xff]  }
  0x40   :  { %1142 = vmatpush3.bf16.msra.mxu0 %v1290_v58  ;;  %v1318_v58 = vld [vmem:[%s1516_s6 + $0x8] sm:$0xff]  }
  0x41   :  { %1164 = vmatpush3.bf16.msra.mxu1 %v1291_v59  ;;  %1143 = vmatprep.subr.bf16.mxu0 %v1292_v60  ;;  %v1319_v59 = vld [vmem:[%s1516_s6] sm:$0xff]   ;;  %v868_v60 = vlaneseq }
  0x42   :  { %1165 = vmatprep.subr.bf16.mxu1 %v1293_v61 }
  0x43   :  { %v869_v61 = vand.u32 127, %v868_v60 }
  0x44   :  { %1144 = vmatpush3.bf16.msra.mxu0 %v1294_v62  ;;  %v1071_v62 = vld [vmem:[%s1514_s4] ss:$0 sm:$0xff] }
  0x45   :  { %1166 = vmatpush3.bf16.msra.mxu1 %v1295_v63  ;;  %1145 = vmatprep.subr.bf16.mxu0 %v1296_v0  ;;  %vm872_vm1 = vcmp.ge.s32.totalorder %v869_v61, 32  ;;  %vm873_vm2 = vcmp.lt.s32.totalorder %v869_v61, 64  ;;  %vm870_vm4 = vcmp.lt.s32.totalorder %v869_v61, 32 }
  0x46   :  { %1167 = vmatprep.subr.bf16.mxu1 %v1297_v1  ;;  %vm874_vm3 = vmand %vm872_vm1, %vm873_vm2 }
  0x48   :  { %1146 = vmatpush3.bf16.msra.mxu0 %v1298_v2 }
  0x49   :  { %1168 = vmatpush3.bf16.msra.mxu1 %v1299_v3  ;;  %1147 = vmatprep.subr.bf16.mxu0 %v1300_v4 }
  0x4a   :  { %1169 = vmatprep.subr.bf16.mxu1 %v1301_v5 }
  0x4c   :  { %1148 = vmatpush3.bf16.msra.mxu0 %v1302_v6 }
  0x4d   :  { %1170 = vmatpush3.bf16.msra.mxu1 %v1303_v7  ;;  %1195 = vmatprep.subr.bf16.mxu0 %v1347_v17  ;;  %v879_v7 = vld [vmem:[%s1515_s5] sm:$0xff] }
  0x4e   :  { %1215 = vmatprep.subr.bf16.mxu1 %v1347_v17 }
  0x4f   :  { %693 = vmatmul.mubr.bf16.vlgmr.msra.gmra.mxu0 %v64_v14 }
  0x50   :  { %733 = vmatmul.mubr.bf16.vlgmr.msra.gmra.mxu1 %v66_v15  ;;  %1196 = vmatpush3.bf16.msra.mxu0 %v1304_v16 }
  0x51   :  { %1197 = vmatprep.subr.bf16.mxu0 %v1347_v17  ;;  %1211 = vmatprep.mubr.msk.bf16.mxu0 %vm1348_vm0, %v1347_v17 }
  0x52   :  { %1231 = vmatprep.mubr.msk.bf16.mxu1 %vm1348_vm0, %v1347_v17  ;;  %1216 = vmatpush3.bf16.msra.mxu1 %v1312_v25 }
  0x53   :  { %1217 = vmatprep.subr.bf16.mxu1 %v1347_v17 }
  0x54   :  { %1198 = vmatpush3.bf16.msra.mxu0 %v1305_v18 }
  0x55   :  { %1199 = vmatprep.subr.bf16.mxu0 %v1347_v17 }
  0x56   :  { %1218 = vmatpush3.bf16.msra.mxu1 %v1313_v53 }
  0x57   :  { %1219 = vmatprep.subr.bf16.mxu1 %v1347_v17 }
  0x58   :  { %1200 = vmatpush3.bf16.msra.mxu0 %v1306_v19 }
  0x59   :  { %1201 = vmatprep.subr.bf16.mxu0 %v1347_v17 }
  0x5a   :  { %1220 = vmatpush3.bf16.msra.mxu1 %v1314_v54 }
  0x5b   :  { %1221 = vmatprep.subr.bf16.mxu1 %v1347_v17 }
  0x5c   :  { %1202 = vmatpush3.bf16.msra.mxu0 %v1307_v20 }
  0x5d   :  { %1203 = vmatprep.subr.bf16.mxu0 %v1347_v17 }
  0x5e   :  { %1222 = vmatpush3.bf16.msra.mxu1 %v1315_v55 }
  0x5f   :  { %1223 = vmatprep.subr.bf16.mxu1 %v1347_v17 }
  0x60   :  { %1204 = vmatpush3.bf16.msra.mxu0 %v1308_v21 }
  0x61   :  { %1205 = vmatprep.subr.bf16.mxu0 %v1347_v17 }
  0x62   :  { %1224 = vmatpush3.bf16.msra.mxu1 %v1316_v56 }
  0x63   :  { %1225 = vmatprep.subr.bf16.mxu1 %v1347_v17 }
  0x64   :  { %1206 = vmatpush3.bf16.msra.mxu0 %v1309_v22 }
  0x65   :  { %1207 = vmatprep.subr.bf16.mxu0 %v1347_v17 }
  0x66   :  { %1226 = vmatpush3.bf16.msra.mxu1 %v1317_v57 }
  0x67   :  { %1227 = vmatprep.subr.bf16.mxu1 %v1347_v17 }
  0x68   :  { %1208 = vmatpush3.bf16.msra.mxu0 %v1310_v23 }
  0x69   :  { %1209 = vmatprep.subr.bf16.mxu0 %v1347_v17 }
  0x6a   :  { %1228 = vmatpush3.bf16.msra.mxu1 %v1318_v58 }
  0x6b   :  { %1229 = vmatprep.subr.bf16.mxu1 %v1347_v17 }
  0x6c   :  { %1210 = vmatpush3.bf16.msra.mxu0 %v1311_v24 }
  0x6e   :  { %1230 = vmatpush3.bf16.msra.mxu1 %v1319_v59 }
  0xef   :  { %v1105_v26 = vpop.f32.mrf.mxu0 }
  0xf0   :  { %v1127_v27 = vpop.f32.mrf.mxu1 }
  0xf1   :  { %v1106_v28 = vpop.f32.mrf.mxu0 }
  0xf2   :  { %v1128_v29 = vpop.f32.mrf.mxu1  ;;  %v1107_v34 = vadd.f32 %v1106_v28, %v1105_v26 }
  0xf3   :  { %v1108_v30 = vpop.f32.mrf.mxu0  ;;  %v1129_v35 = vadd.f32 %v1128_v29, %v1127_v27 }
  0xf4   :  { %v1130_v31 = vpop.f32.mrf.mxu1 }
  0xf5   :  { %v1109_v32 = vpop.f32.mrf.mxu0  ;;  %v655_v39 = vadd.f32 %v1129_v35, %v1107_v34 }
  0xf6   :  { %v1131_v33 = vpop.f32.mrf.mxu1 }
 0x10f   :  { %v1149_v36 = vpop.f32.mrf.mxu0 }
 0x110   :  { %v1171_v37 = vpop.f32.mrf.mxu1 }
 0x111   :  { %v1150_v38 = vpop.f32.mrf.mxu0 }
 0x112   :  { %v1151_v40 = vadd.f32 %v1150_v38, %v1149_v36  ;;  %v1172_v41 = vpop.f32.mrf.mxu1 }
 0x113   :  { %v1152_v42 = vpop.f32.mrf.mxu0  ;;  %v1173_v44 = vadd.f32 %v1172_v41, %v1171_v37 }
 0x114   :  { %v695_v43 = vadd.f32 %v1151_v40, %v655_v39  ;;  %v1174_v45 = vpop.f32.mrf.mxu1 }
 0x115   :  { %v1153_v47 = vpop.f32.mrf.mxu0 }
 0x116   :  { %v735_v48 = vadd.f32 %v1173_v44, %v695_v43  ;;  %v1175_v49 = vpop.f32.mrf.mxu1 }
 0x118   :  { %v753_v50 = vadd.f32 %v1070_v46, %v735_v48 }
 0x11a   :  { %v754_v51 = vmax.f32 %v753_v50, 0.0 }
 0x11c   :  { %v755_v52 = vpack.c.bf16 %v754_v51, %v754_v51 }
 0x11e   :  { %1212 = vmatmul.mubr.bf16.vlgmr.msra.gmra.mxu0 %v755_v52 }
 0x1de   :  { %v861_v63 = vpop.f32.mrf.mxu0 }
 0x1df   :  { %v862_v0 = vadd.f32 %v1071_v62, %v861_v63 }
 0x1e0   :  { %v1213_v1 = vpop.f32.mrf.mxu0 }
 0x1e1   :  { %867 = vst [vmem:[%s1518_s8] sm:$0xff] %v862_v0  ;;  %v875_v2 = vsel %vm874_vm3, %v862_v0, 0.0  ;;  %v871_v10 = vsel %vm870_vm4, %v862_v0, 0.0 }
 0x1e2   :  { %v876_v3 = vmul.f32 0.5, %v875_v2  ;;  %v864_v4 = vpop.f32.mrf.mxu0 }
 0x1e4   :  { %v877_v5 = vmul.f32 1.442695, %v876_v3  ;;  %v1214_v6 = vpop.f32.mrf.mxu0 }
 0x1e6   :  { %1320 = vpow2.f32 %v877_v5 }
 0x1f3   :  { %v1321_v8 = vpop.eup %1320 }
 0x1f4   :  { %v880_v9 = vmul.f32 %v1321_v8, %v879_v7 }
 0x1f6   :  { %v881_v11 = vadd.f32 %v880_v9, %v871_v10 }
 0x1f8   :  { %v882_v12 = vpack.c.bf16 %v881_v11, %v881_v11 }
 0x1fa   :  { %1232 = vmatmul.mubr.bf16.vlgmr.msra.gmra.mxu1 %v882_v12 }
 0x2ba   :  { %v988_v14 = vpop.f32.mrf.mxu1 }
 0x2bb   :  { %v989_v15 = vadd.f32 %v1080_v13, %v988_v14 }
 0x2bc   :  { %v1233_v16 = vpop.f32.mrf.mxu1 }
 0x2bd   :  { %v994_v17 = vmax.f32 %v989_v15, 0.0 }
 0x2be   :  { %v991_v18 = vpop.f32.mrf.mxu1 }
 0x2bf   :  { %v995_v19 = vpack.c.bf16 %v994_v17, %v994_v17 }
 0x2c0   :  { %v1234_v20 = vpop.f32.mrf.mxu1 }
 0x2c1   :  { %996 = vst [vmem:[%s1519_s9] sm:$0xf] %v995_v19 }
 0x2c2   :  { %1005 = vsyncpa [#allocation4], 1 }

</bundles_post_ra>
